<compile_context>
chip_gen: v7x
topology: tpu7x:2x2x1
jax: 0.10.0
libtpu: 0.0.40
codegen_flags: <defaults>
</compile_context>

<pallas_src>
import functools
import numpy as np
import jax
import jax.numpy as jnp
from jax import lax
from jax.experimental import pallas as pl
from jax.experimental.pallas import tpu as pltpu


# --------------------------------------------------------------------------------------
# small helpers
# --------------------------------------------------------------------------------------
def _pick_tile(dim, cap, steps):
    """Largest multiple of one of `steps` (tried in order, <= cap) dividing `dim`,
    else the full dim."""
    for step in steps:
        t = min(cap, (dim // step) * step)
        while t >= step:
            if dim % t == 0:
                return t
            t -= step
    return dim


@functools.lru_cache(maxsize=1)
def _vmem_limit_bytes():
    # Generation-aware VMEM budget: ~half of physical (64 MiB cap) on v5e/v6e,
    # ~32 MiB headroom on v7x (64 MiB physical).  Fallback for emulation.
    try:
        info = pltpu.get_tpu_info()
        cap = getattr(info, "vmem_capacity_bytes", None)
        if cap:
            return int(min(cap // 2, 64 * 1024 * 1024))
    except Exception:
        pass
    return 32 * 1024 * 1024


def _cparams(*dim_sem):
    return pltpu.CompilerParams(dimension_semantics=tuple(dim_sem),
                                vmem_limit_bytes=_vmem_limit_bytes())


# --------------------------------------------------------------------------------------
# Tiled linear: X @ W + b (optional ReLU), bf16 MXU operands, f32 VMEM accumulator
# --------------------------------------------------------------------------------------
def _matmul_kernel(x_ref, w_ref, b_ref, o_ref, acc_ref, *, relu):
    @pl.when(pl.program_id(2) == 0)
    def _init():
        acc_ref[...] = jnp.zeros_like(acc_ref)

    acc_ref[...] += jnp.dot(x_ref[...], w_ref[...],
                            preferred_element_type=jnp.float32)

    @pl.when(pl.program_id(2) == pl.num_programs(2) - 1)
    def _fin():
        y = acc_ref[...] + b_ref[...]
        if relu:
            y = jnp.maximum(y, 0.0)
        o_ref[...] = y.astype(o_ref.dtype)


def linear_pallas(x, w, b=None, relu=False, out_dtype=jnp.float32):
    """x: (M, K) bf16, w: (K, N) bf16, b: (1, N) f32 or None -> (M, N) out_dtype."""
    if x.dtype != jnp.bfloat16:
        x = x.astype(jnp.bfloat16)
    if w.dtype != jnp.bfloat16:
        w = w.astype(jnp.bfloat16)
    M, K = x.shape
    N = w.shape[1]
    if b is None:
        b = jnp.zeros((1, N), jnp.float32)
    tm = _pick_tile(M, 256, (16, 8))
    tn_cap = 1024 if N >= 2048 else 512
    tn = _pick_tile(N, tn_cap, (256, 128))
    tk = _pick_tile(K, 512, (256, 128))
    grid = (M // tm, N // tn, K // tk)
    return pl.pallas_call(
        functools.partial(_matmul_kernel, relu=relu),
        grid=grid,
        in_specs=[
            pl.BlockSpec((tm, tk), lambda i, j, k: (i, k)),
            pl.BlockSpec((tk, tn), lambda i, j, k: (k, j)),
            pl.BlockSpec((1, tn), lambda i, j, k: (0, j)),
        ],
        out_specs=pl.BlockSpec((tm, tn), lambda i, j, k: (i, j)),
        out_shape=jax.ShapeDtypeStruct((M, N), out_dtype),
        scratch_shapes=[pltpu.VMEM((tm, tn), jnp.float32)],
        compiler_params=_cparams("parallel", "parallel", "arbitrary"),
    )(x, w, b)


# --------------------------------------------------------------------------------------
# Attention kernels: grid over batch, all heads in-kernel, in-kernel mask generation,
# per-head context accumulated in a VMEM scratch, attention maps in torch layout.
# --------------------------------------------------------------------------------------
def _attn_body(lens_ref, q, k, v, o_ref, a_ref, ctx_ref, *, n_head, d_k, d_v, causal):
    b = pl.program_id(0)
    klen = lens_ref[b]                                      # scalar key length for this batch
    Tq, Tk = q.shape[0], k.shape[0]
    col = lax.broadcasted_iota(jnp.int32, (Tq, Tk), 1)
    mask = col >= klen                                      # key-padding mask
    if causal:
        row = lax.broadcasted_iota(jnp.int32, (Tq, Tk), 0)
        mask = jnp.logical_or(mask, col > row)              # subsequent (causal) mask
    neg = jnp.float32(-1e9)                                 # finite -> no NaN rows
    # 1/temperature is already folded into the Q projection weights (prep time).
    for h in range(n_head):
        qh = q[:, h * d_k:(h + 1) * d_k]
        kh = k[:, h * d_k:(h + 1) * d_k]
        vh = v[:, h * d_v:(h + 1) * d_v]
        s = lax.dot_general(qh, kh, (((1,), (1,)), ((), ())),
                            preferred_element_type=jnp.float32)        # (Tq, Tk)
        s = jnp.where(mask, neg, s)
        smax = jnp.max(s, axis=-1, keepdims=True)
        e = jnp.exp(s - smax)
        p = e * pl.reciprocal(jnp.sum(e, axis=-1, keepdims=True), approx=True)
        if a_ref is not None:
            a_ref[h, 0] = p                                 # torch layout (H, B, Tq, Tk)
        ctx_ref[:, h * d_v:(h + 1) * d_v] = jnp.dot(p.astype(jnp.bfloat16), vh,
                                                    preferred_element_type=jnp.float32)
    # single lane-dense store of all heads: (Tq, n_head*d_v)
    o_ref[0] = ctx_ref[...].astype(o_ref.dtype)


def _self_attn_kernel(lens_ref, qkv_ref, o_ref, *rest, n_head, d_k, d_v, return_attn):
    a_ref = rest[0] if return_attn else None
    ctx_ref = rest[-1]
    hdk, hdv = n_head * d_k, n_head * d_v
    s = qkv_ref[0]                                          # (Tq, 2*hdk + hdv) bf16
    _attn_body(lens_ref, s[:, :hdk], s[:, hdk:2 * hdk], s[:, 2 * hdk:2 * hdk + hdv],
               o_ref, a_ref, ctx_ref, n_head=n_head, d_k=d_k, d_v=d_v, causal=True)


def _cross_attn_kernel(lens_ref, q_ref, kv_ref, o_ref, *rest, n_head, d_k, d_v, return_attn):
    a_ref = rest[0] if return_attn else None
    ctx_ref = rest[-1]
    hdk, hdv = n_head * d_k, n_head * d_v
    kv = kv_ref[0]                                          # (Tk, hdk + hdv) bf16
    _attn_body(lens_ref, q_ref[0], kv[:, :hdk], kv[:, hdk:hdk + hdv],
               o_ref, a_ref, ctx_ref, n_head=n_head, d_k=d_k, d_v=d_v, causal=False)


def _attn_call(kern, lens, inputs, in_specs, B, Tq, Tk, n_head, d_v, return_attn):
    hdv = n_head * d_v
    out_shape = [jax.ShapeDtypeStruct((B, Tq, hdv), jnp.bfloat16)]
    out_specs = [pl.BlockSpec((1, Tq, hdv), lambda b, lens_ref: (b, 0, 0))]
    if return_attn:
        # emit directly in torch (head-major) layout: (n_head, B, Tq, Tk)
        out_shape.append(jax.ShapeDtypeStruct((n_head, B, Tq, Tk), jnp.float32))
        out_specs.append(pl.BlockSpec((n_head, 1, Tq, Tk),
                                      lambda b, lens_ref: (0, b, 0, 0)))
    res = pl.pallas_call(
        kern,
        grid_spec=pltpu.PrefetchScalarGridSpec(
            num_scalar_prefetch=1, grid=(B,), in_specs=in_specs, out_specs=out_specs,
            scratch_shapes=[pltpu.VMEM((Tq, hdv), jnp.float32)]),
        out_shape=out_shape,
        compiler_params=_cparams("parallel"),
    )(lens.astype(jnp.int32), *inputs)
    return res[0], (res[1] if return_attn else None)


def self_attention(lens, qkv, n_head, d_k, d_v, return_attn):
    B, Tq, qkv_w = qkv.shape
    kern = functools.partial(_self_attn_kernel, n_head=n_head, d_k=d_k, d_v=d_v,
                             return_attn=return_attn)
    in_specs = [pl.BlockSpec((1, Tq, qkv_w), lambda b, lens_ref: (b, 0, 0))]
    return _attn_call(kern, lens, (qkv,), in_specs, B, Tq, Tq, n_head, d_v, return_attn)


def cross_attention(lens, q, kv, n_head, d_k, d_v, return_attn):
    B, Tq, hdk = q.shape
    Tk, kv_w = kv.shape[1], kv.shape[2]
    kern = functools.partial(_cross_attn_kernel, n_head=n_head, d_k=d_k, d_v=d_v,
                             return_attn=return_attn)
    in_specs = [pl.BlockSpec((1, Tq, hdk), lambda b, lens_ref: (b, 0, 0)),
                pl.BlockSpec((1, Tk, kv_w), lambda b, lens_ref: (b, 0, 0))]
    return _attn_call(kern, lens, (q, kv), in_specs, B, Tq, Tk, n_head, d_v, return_attn)


# --------------------------------------------------------------------------------------
# Fused sub-layer epilogues (emit f32 residual copy + bf16 copy for next projection)
# --------------------------------------------------------------------------------------
def _mha_out_kernel(ctx_ref, w_ref, b_ref, res_ref, g_ref, bt_ref, m_ref,
                    o32_ref, o16_ref, *, eps):
    # FC projection + bias + residual + LayerNorm + non_pad_mask, all in one pass.
    y = jnp.dot(ctx_ref[...], w_ref[...], preferred_element_type=jnp.float32)
    y = y + b_ref[...] + res_ref[...]
    mean = jnp.mean(y, axis=-1, keepdims=True)
    var = jnp.mean(jnp.square(y - mean), axis=-1, keepdims=True)
    norm = (y - mean) * lax.rsqrt(var + eps)
    out = (norm * g_ref[...] + bt_ref[...]) * m_ref[...]
    o32_ref[...] = out
    o16_ref[...] = out.astype(jnp.bfloat16)


def mha_epilogue(ctx, w_fc, b_fc, residual, gamma, beta, mask_rows):
    M, Kc = ctx.shape
    D = w_fc.shape[1]
    tm = _pick_tile(M, 256, (16, 8))
    return pl.pallas_call(
        functools.partial(_mha_out_kernel, eps=1e-5),
        grid=(M // tm,),
        in_specs=[
            pl.BlockSpec((tm, Kc), lambda i: (i, 0)),
            pl.BlockSpec((Kc, D), lambda i: (0, 0)),
            pl.BlockSpec((1, D), lambda i: (0, 0)),
            pl.BlockSpec((tm, D), lambda i: (i, 0)),
            pl.BlockSpec((1, D), lambda i: (0, 0)),
            pl.BlockSpec((1, D), lambda i: (0, 0)),
            pl.BlockSpec((tm, 1), lambda i: (i, 0)),
        ],
        out_specs=[pl.BlockSpec((tm, D), lambda i: (i, 0)),
                   pl.BlockSpec((tm, D), lambda i: (i, 0))],
        out_shape=[jax.ShapeDtypeStruct((M, D), jnp.float32),
                   jax.ShapeDtypeStruct((M, D), jnp.bfloat16)],
        compiler_params=_cparams("parallel"),
    )(ctx, w_fc, b_fc, residual, gamma, beta, mask_rows)


def _ffn_kernel(x_ref, w1_ref, b1_ref, w2_ref, b2_ref, g_ref, bt_ref, m_ref,
                o32_ref, o16_ref, *, eps):
    # w2(relu(w1 x + b1)) + b2 + residual -> LayerNorm -> *mask, hidden kept in VMEM (bf16).
    x = x_ref[...]
    h = jnp.dot(x.astype(jnp.bfloat16), w1_ref[...],
                preferred_element_type=jnp.float32) + b1_ref[...]
    h = jnp.maximum(h, 0.0).astype(jnp.bfloat16)            # bf16 hidden -> MXU + less spill
    y = jnp.dot(h, w2_ref[...], preferred_element_type=jnp.float32) + b2_ref[...] + x
    mean = jnp.mean(y, axis=-1, keepdims=True)
    var = jnp.mean(jnp.square(y - mean), axis=-1, keepdims=True)
    norm = (y - mean) * lax.rsqrt(var + eps)
    out = (norm * g_ref[...] + bt_ref[...]) * m_ref[...]
    o32_ref[...] = out
    o16_ref[...] = out.astype(jnp.bfloat16)


def ffn_fused(x, p, mask_rows):
    M, D = x.shape
    dff = p["w1"].shape[1]
    tm = _pick_tile(M, 256, (16, 8))
    return pl.pallas_call(
        functools.partial(_ffn_kernel, eps=1e-5),
        grid=(M // tm,),
        in_specs=[
            pl.BlockSpec((tm, D), lambda i: (i, 0)),
            pl.BlockSpec((D, dff), lambda i: (0, 0)),
            pl.BlockSpec((1, dff), lambda i: (0, 0)),
            pl.BlockSpec((dff, D), lambda i: (0, 0)),
            pl.BlockSpec((1, D), lambda i: (0, 0)),
            pl.BlockSpec((1, D), lambda i: (0, 0)),
            pl.BlockSpec((1, D), lambda i: (0, 0)),
            pl.BlockSpec((tm, 1), lambda i: (i, 0)),
        ],
        out_specs=[pl.BlockSpec((tm, D), lambda i: (i, 0)),
                   pl.BlockSpec((tm, D), lambda i: (i, 0))],
        out_shape=[jax.ShapeDtypeStruct((M, D), jnp.float32),
                   jax.ShapeDtypeStruct((M, D), jnp.bfloat16)],
        compiler_params=_cparams("parallel"),
    )(x, p["w1"], p["b1"], p["w2"], p["b2"], p["ln_g"], p["ln_b"], mask_rows)


# --------------------------------------------------------------------------------------
# Model glue (plain JAX / numpy)
# --------------------------------------------------------------------------------------
def preprocess(padded_input, ignore_id, sos_id, eos_id):
    """pad_list-style preprocess: prepend sos / append eos, pad with eos / ignore."""
    padded_input = np.asarray(padded_input)
    ys = [y[y != ignore_id] for y in padded_input]
    ys_in = [np.concatenate([[sos_id], y]).astype(np.int32) for y in ys]
    ys_out = [np.concatenate([y, [eos_id]]).astype(np.int32) for y in ys]
    maxlen = max(len(y) for y in ys_in)
    ys_in_pad = np.full((len(ys_in), maxlen), eos_id, dtype=np.int32)
    ys_out_pad = np.full((len(ys_out), maxlen), ignore_id, dtype=np.int32)
    for i, (yi, yo) in enumerate(zip(ys_in, ys_out)):
        ys_in_pad[i, : len(yi)] = yi
        ys_out_pad[i, : len(yo)] = yo
    return jnp.asarray(ys_in_pad), jnp.asarray(ys_out_pad)


def positional_encoding(length, d_model):
    pos = np.arange(length)[:, None].astype(np.float32)
    div = np.exp(np.arange(0, d_model, 2).astype(np.float32) * -(np.log(10000.0) / d_model))
    pe = np.zeros((length, d_model), np.float32)
    pe[:, 0::2] = np.sin(pos * div)
    pe[:, 1::2] = np.cos(pos * div)
    return jnp.asarray(pe)[None]                                     # (1, T, D)


# --------------------------------------------------------------------------------------
# Forward
# --------------------------------------------------------------------------------------
def decoder_forward(prep, cfg, padded_input, encoder_padded_outputs,
                    encoder_input_lengths, target_lengths):
    sos_id, eos_id, ignore_id = cfg["sos_id"], cfg["eos_id"], cfg["ignore_id"]
    d_model, n_head, d_k, d_v = cfg["d_model"], cfg["n_head"], cfg["d_k"], cfg["d_v"]
    n_layers = cfg["n_layers"]

    ys_in_pad, ys_out_pad = preprocess(padded_input, ignore_id, sos_id, eos_id)
    ys_in_lens = (jnp.asarray(target_lengths) + 1).astype(jnp.int32)
    enc_lens = jnp.asarray(encoder_input_lengths).astype(jnp.int32)
    B, T = ys_in_pad.shape
    Ti = encoder_padded_outputs.shape[1]
    H, dk, dv = n_head, d_k, d_v

    non_pad_rows = (ys_in_pad != eos_id).astype(jnp.float32).reshape(B * T, 1)

    # embedding gather + positional encoding (dropout is identity in eval mode)
    emb = jnp.take(prep["emb"], ys_in_pad, axis=0)
    dec32 = (emb * cfg["x_logit_scale"] + positional_encoding(T, d_model)).astype(jnp.float32)
    dec32 = dec32.reshape(B * T, d_model)
    dec16 = dec32.astype(jnp.bfloat16)                       # one-time cast for matmul input

    enc16 = encoder_padded_outputs.astype(jnp.bfloat16).reshape(B * Ti, d_model)

    outputs = {}
    enc_attn_last = None
    for i, lp in enumerate(prep["layers"]):
        want_slf = (i == 0) or (i == n_layers // 2)
        want_enc = (i == n_layers - 1)

        # ---- masked self-attention: fused QKV proj -> attention -> FC+res+LN+mask ----
        qkv = linear_pallas(dec16, lp["slf"]["w_qkv"], lp["slf"]["b_qkv"],
                            out_dtype=jnp.bfloat16).reshape(B, T, 2 * H * dk + H * dv)
        ctx, slf_attn = self_attention(ys_in_lens, qkv, H, dk, dv, want_slf)
        dec32, dec16 = mha_epilogue(ctx.reshape(B * T, H * dv), lp["slf"]["w_fc"],
                                    lp["slf"]["b_fc"], dec32,
                                    lp["slf"]["ln_g"], lp["slf"]["ln_b"], non_pad_rows)

        # ---- encoder-decoder attention: Q proj + fused KV proj -> attention -> epilogue ----
        q = linear_pallas(dec16, lp["enc"]["w_q"], lp["enc"]["b_q"],
                          out_dtype=jnp.bfloat16).reshape(B, T, H * dk)
        kv = linear_pallas(enc16, lp["enc"]["w_kv"], lp["enc"]["b_kv"],
                           out_dtype=jnp.bfloat16).reshape(B, Ti, H * dk + H * dv)
        ctx, enc_attn = cross_attention(enc_lens, q, kv, H, dk, dv, want_enc)
        dec32, dec16 = mha_epilogue(ctx.reshape(B * T, H * dv), lp["enc"]["w_fc"],
                                    lp["enc"]["b_fc"], dec32,
                                    lp["enc"]["ln_g"], lp["enc"]["ln_b"], non_pad_rows)

        # ---- position-wise FFN (fully fused) ----
        dec32, dec16 = ffn_fused(dec32, lp["ffn"], non_pad_rows)

        if want_slf:
            # maps are already head-major (H, B, Tq, Tk) -> torch layout is just a reshape
            a = slf_attn.reshape(H * B, T, T)
            if i == 0:
                outputs["dec_slf_attn_0"] = a
            if i == n_layers // 2:
                outputs["dec_slf_attn_3"] = a
        if want_enc:
            enc_attn_last = enc_attn.reshape(H * B, T, Ti)

    outputs["dec_enc_attn"] = enc_attn_last

    # tied output projection (embedding transposed / padded / bf16-cast once at prep time)
    logits = linear_pallas(dec16, prep["emb_prj"], None)
    logits = logits[:, : cfg["vocab_size"]]
    outputs["pred"] = logits.reshape(B, T, cfg["vocab_size"])
    outputs["gold"] = ys_out_pad
    return outputs


# --------------------------------------------------------------------------------------
# Parameters: deterministic synthetic init + one-time inference prep (fuse + bf16)
# --------------------------------------------------------------------------------------
def init_decoder_params(key, cfg):
    vocab, d_model = cfg["vocab_size"], cfg["d_model"]
    n_head, d_k, d_v, ffn_dim = cfg["n_head"], cfg["d_k"], cfg["d_v"], cfg["ffn_dim"]
    keys = jax.random.split(key, 1 + cfg["n_layers"])
    params = {"emb": jax.random.normal(keys[0], (vocab, d_model), jnp.float32)}

    def mha_params(k):
        ks = jax.random.split(k, 4)
        return {
            "w_qs": 0.1 * jax.random.normal(ks[0], (d_model, n_head * d_k), jnp.float32),
            "b_qs": jnp.zeros((n_head * d_k,), jnp.float32),
            "w_ks": 0.1 * jax.random.normal(ks[1], (d_model, n_head * d_k), jnp.float32),
            "b_ks": jnp.zeros((n_head * d_k,), jnp.float32),
            "w_vs": 0.1 * jax.random.normal(ks[2], (d_model, n_head * d_v), jnp.float32),
            "b_vs": jnp.zeros((n_head * d_v,), jnp.float32),
            "w_fc": 0.1 * jax.random.normal(ks[3], (n_head * d_v, d_model), jnp.float32),
            "b_fc": jnp.zeros((d_model,), jnp.float32),
            "ln_g": jnp.ones((d_model,), jnp.float32),
            "ln_b": jnp.zeros((d_model,), jnp.float32),
        }

    def ffn_params(k):
        ks = jax.random.split(k, 2)
        return {
            "w1": 0.1 * jax.random.normal(ks[0], (d_model, ffn_dim), jnp.float32),
            "b1": jnp.zeros((ffn_dim,), jnp.float32),
            "w2": 0.1 * jax.random.normal(ks[1], (ffn_dim, d_model), jnp.float32),
            "b2": jnp.zeros((d_model,), jnp.float32),
            "ln_g": jnp.ones((d_model,), jnp.float32),
            "ln_b": jnp.zeros((d_model,), jnp.float32),
        }

    layers = []
    for li in range(cfg["n_layers"]):
        lks = jax.random.split(keys[1 + li], 3)
        layers.append({"slf": mha_params(lks[0]), "enc": mha_params(lks[1]),
                       "ffn": ffn_params(lks[2])})
    params["layers"] = layers
    return params


def prepare_params(params, cfg):
    """One-time prep: fold 1/sqrt(d_k) into Q, concat Q/K/V (and K/V) weights, cast
    matmul weights to bf16, reshape biases/LN to (1, N), precompute the (padded,
    transposed, bf16) tied projection weight."""
    scale = float(1.0 / np.sqrt(cfg["d_k"]))

    def _mha(p, fuse_q):
        wq = (p["w_qs"] * scale).astype(jnp.bfloat16)        # temperature folded into Q
        bq = (p["b_qs"] * scale).astype(jnp.float32)
        wk, wv = p["w_ks"].astype(jnp.bfloat16), p["w_vs"].astype(jnp.bfloat16)
        bk, bv = p["b_ks"].astype(jnp.float32), p["b_vs"].astype(jnp.float32)
        out = {
            "w_fc": p["w_fc"].astype(jnp.bfloat16),
            "b_fc": p["b_fc"].reshape(1, -1).astype(jnp.float32),
            "ln_g": p["ln_g"].reshape(1, -1).astype(jnp.float32),
            "ln_b": p["ln_b"].reshape(1, -1).astype(jnp.float32),
        }
        if fuse_q:
            out["w_qkv"] = jnp.concatenate([wq, wk, wv], axis=1)
            out["b_qkv"] = jnp.concatenate([bq, bk, bv]).reshape(1, -1)
        else:
            out["w_q"] = wq
            out["b_q"] = bq.reshape(1, -1)
            out["w_kv"] = jnp.concatenate([wk, wv], axis=1)
            out["b_kv"] = jnp.concatenate([bk, bv]).reshape(1, -1)
        return out

    def _ffn(p):
        return {
            "w1": p["w1"].astype(jnp.bfloat16),
            "b1": p["b1"].reshape(1, -1).astype(jnp.float32),
            "w2": p["w2"].astype(jnp.bfloat16),
            "b2": p["b2"].reshape(1, -1).astype(jnp.float32),
            "ln_g": p["ln_g"].reshape(1, -1).astype(jnp.float32),
            "ln_b": p["ln_b"].reshape(1, -1).astype(jnp.float32),
        }

    # tied projection: transpose once, pad vocab to a 128-lane multiple (lane-dense,
    # unmasked stores in the tiled matmul), cast to bf16 once.
    emb_t = jnp.transpose(params["emb"])                     # (d_model, vocab)
    vocab = emb_t.shape[1]
    n_pad = (-vocab) % 128
    if n_pad:
        emb_t = jnp.pad(emb_t, ((0, 0), (0, n_pad)))
    return {
        "emb": params["emb"].astype(jnp.float32),
        "emb_prj": emb_t.astype(jnp.bfloat16),
        "layers": [{"slf": _mha(lp["slf"], True), "enc": _mha(lp["enc"], False),
                    "ffn": _ffn(lp["ffn"])} for lp in params["layers"]],
    }


# --------------------------------------------------------------------------------------
# Main
# --------------------------------------------------------------------------------------
if __name__ == "__main__":
    cfg = dict(
        sos_id=0, eos_id=2, ignore_id=1,
        vocab_size=50, d_model=32, n_layers=2, n_head=4,
        ffn_dim=64,
    )
    cfg["d_k"] = cfg["d_model"] // cfg["n_head"]
    cfg["d_v"] = cfg["d_model"] // cfg["n_head"]
    cfg["x_logit_scale"] = cfg["d_model"] ** (-0.5)      # tgt_emb_prj_weight_sharing=True

    key = jax.random.PRNGKey(0)
    k_tok, k_enc, k_par = jax.random.split(key, 3)

    N, To, Ti = 2, 5, 10
    target_lengths = jnp.array([5, 3], dtype=jnp.int32)
    tokens = jax.random.randint(k_tok, (N, To), 3, cfg["vocab_size"], dtype=jnp.int32)
    pad_mask = jnp.arange(To)[None, :] < target_lengths[:, None]
    padded_input = jnp.where(pad_mask, tokens, cfg["ignore_id"])       # N x To, ignore_id padded

    encoder_padded_outputs = jax.random.normal(k_enc, (N, Ti, cfg["d_model"]), jnp.float32)
    encoder_input_lengths = jnp.array([10, 7], dtype=jnp.int32)

    params = init_decoder_params(k_par, cfg)
    prep = prepare_params(params, cfg)

    # TODO(synk): recognize_beam (beam-search decode) is host-side control flow and is not ported.
    outputs = decoder_forward(prep, cfg, padded_input, encoder_padded_outputs,
                              encoder_input_lengths, target_lengths)
    jax.block_until_ready(outputs["pred"])

    assert outputs["pred"].shape == (N, To + 1, cfg["vocab_size"])
    assert outputs["gold"].shape == (N, To + 1)
    assert outputs["dec_slf_attn_0"].shape == (cfg["n_head"] * N, To + 1, To + 1)
    assert outputs["dec_enc_attn"].shape == (cfg["n_head"] * N, To + 1, Ti)
    assert "dec_slf_attn_3" in outputs
    assert bool(jnp.all(jnp.isfinite(outputs["pred"])))
    assert bool(jnp.all(jnp.isfinite(outputs["dec_slf_attn_0"])))
    assert bool(jnp.all(jnp.isfinite(outputs["dec_enc_attn"])))
    print("KERNEL_OK")
</pallas_src>

<mosaic_0001>
module attributes {stable_mosaic.version = 11 : i64} {
  func.func @_matmul_kernel(%arg0: i32, %arg1: i32, %arg2: i32, %arg3: memref<12x32xbf16, #tpu.memory_space<vmem>>, %arg4: memref<32x96xbf16, #tpu.memory_space<vmem>>, %arg5: memref<1x96xf32, #tpu.memory_space<vmem>>, %arg6: memref<12x96xbf16, #tpu.memory_space<vmem>>, %arg7: memref<12x96xf32, #tpu.memory_space<vmem>>) attributes {dimension_semantics = [#tpu.dimension_semantics<parallel>, #tpu.dimension_semantics<parallel>, #tpu.dimension_semantics<arbitrary>], iteration_bounds = array<i64: 1, 1, 1>, scalar_prefetch = 0 : i64, scratch_operands = 1 : i64, tpu.core_type = #tpu.core_type<tc>, window_params = [{transform_indices = @transform_0, window_bounds = array<i64: 12, 32>}, {transform_indices = @transform_1, window_bounds = array<i64: 32, 96>}, {transform_indices = @transform_2, window_bounds = array<i64: 1, 96>}, {transform_indices = @transform_3, window_bounds = array<i64: 12, 96>}]} {
    %c0_i32 = arith.constant 0 : i32
    %0 = arith.cmpi eq, %arg2, %c0_i32 : i32
    %1 = arith.extui %0 : i1 to i32
    %c0_i32_0 = arith.constant 0 : i32
    %2 = arith.cmpi ne, %1, %c0_i32_0 : i32
    scf.if %2 {
      %cst_10 = arith.constant 0.000000e+00 : f32
      %12 = vector.broadcast %cst_10 : f32 to vector<12x96xf32>
      %c0_11 = arith.constant 0 : index
      %c0_12 = arith.constant 0 : index
      %13 = vector.load %arg7[%c0_11, %c0_12] : memref<12x96xf32, #tpu.memory_space<vmem>>, vector<12x96xf32>
      tpu.vector_store %arg7[%c0_11, %c0_12], %12 {strides = array<i32>} : memref<12x96xf32, #tpu.memory_space<vmem>>, vector<12x96xf32>,
    } else {
    }
    %c0 = arith.constant 0 : index
    %c0_1 = arith.constant 0 : index
    %3 = vector.load %arg7[%c0, %c0_1] : memref<12x96xf32, #tpu.memory_space<vmem>>, vector<12x96xf32>
    %c0_2 = arith.constant 0 : index
    %c0_3 = arith.constant 0 : index
    %4 = vector.load %arg3[%c0_2, %c0_3] : memref<12x32xbf16, #tpu.memory_space<vmem>>, vector<12x32xbf16>
    %c0_4 = arith.constant 0 : index
    %c0_5 = arith.constant 0 : index
    %5 = vector.load %arg4[%c0_4, %c0_5] : memref<32x96xbf16, #tpu.memory_space<vmem>>, vector<32x96xbf16>
    %cst = arith.constant dense<0.000000e+00> : vector<12x96xf32>
    %6 = tpu.matmul %4, %5, %cst {dimension_numbers = #tpu.dot_dimension_numbers<[1], [0], [0], [1], [0, 0, 1, 1], [], []>} : vector<12x32xbf16>, vector<32x96xbf16>, vector<12x96xf32> -> vector<12x96xf32>
    %7 = arith.addf %3, %6 : vector<12x96xf32>
    %c0_6 = arith.constant 0 : index
    %c0_7 = arith.constant 0 : index
    %8 = vector.load %arg7[%c0_6, %c0_7] : memref<12x96xf32, #tpu.memory_space<vmem>>, vector<12x96xf32>
    tpu.vector_store %arg7[%c0_6, %c0_7], %7 {strides = array<i32>} : memref<12x96xf32, #tpu.memory_space<vmem>>, vector<12x96xf32>,
    %c0_i32_8 = arith.constant 0 : i32
    %9 = arith.cmpi eq, %arg2, %c0_i32_8 : i32
    %10 = arith.extui %9 : i1 to i32
    %c0_i32_9 = arith.constant 0 : i32
    %11 = arith.cmpi ne, %10, %c0_i32_9 : i32
    scf.if %11 {
      %c0_10 = arith.constant 0 : index
      %c0_11 = arith.constant 0 : index
      %12 = vector.load %arg7[%c0_10, %c0_11] : memref<12x96xf32, #tpu.memory_space<vmem>>, vector<12x96xf32>
      %c0_12 = arith.constant 0 : index
      %c0_13 = arith.constant 0 : index
      %13 = vector.load %arg5[%c0_12, %c0_13] : memref<1x96xf32, #tpu.memory_space<vmem>>, vector<1x96xf32>
      %14 = vector.broadcast %13 : vector<1x96xf32> to vector<12x96xf32>
      %15 = arith.addf %12, %14 : vector<12x96xf32>
      %16 = arith.truncf %15 : vector<12x96xf32> to vector<12x96xbf16>
      %c0_14 = arith.constant 0 : index
      %c0_15 = arith.constant 0 : index
      %17 = vector.load %arg6[%c0_14, %c0_15] : memref<12x96xbf16, #tpu.memory_space<vmem>>, vector<12x96xbf16>
      tpu.vector_store %arg6[%c0_14, %c0_15], %16 {strides = array<i32>} : memref<12x96xbf16, #tpu.memory_space<vmem>>, vector<12x96xbf16>,
    } else {
    }
    return
  }
  func.func @transform_0(%arg0: i32, %arg1: i32, %arg2: i32) -> (i32, i32) {
    %c0_i32 = arith.constant 0 : i32
    return %arg0, %arg2 : i32, i32
  }
  func.func @transform_1(%arg0: i32, %arg1: i32, %arg2: i32) -> (i32, i32) {
    %c0_i32 = arith.constant 0 : i32
    return %arg2, %arg1 : i32, i32
  }
  func.func @transform_2(%arg0: i32, %arg1: i32, %arg2: i32) -> (i32, i32) {
    %c0_i32 = arith.constant 0 : i32
    %c0_i32_0 = arith.constant 0 : i32
    return %c0_i32, %arg1 : i32, i32
  }
  func.func @transform_3(%arg0: i32, %arg1: i32, %arg2: i32) -> (i32, i32) {
    %c0_i32 = arith.constant 0 : i32
    return %arg0, %arg1 : i32, i32
  }
}

</mosaic_0001>

<bundles_post_ra>
// kernel: tpu_custom_call.1
= control target key start
LH: loop header
LB: loop body
LE: loop exit
PB: predicated region body
PF: predicated region fallthrough
CT: control target
= control target key end

     0   :  { %8 = vsyncpa [#allocation4], 0  ;;  %s353_s0 = inlined_call_operand.hbm [shape: bf16[12,32], index: 0, kind: input, shape index: {}]   ;;  %s354_s1 = inlined_call_operand.hbm [shape: bf16[32,96], index: 1, kind: input, shape index: {}]   ;;  %s355_s2 = inlined_call_operand.vmem [shape: f32[1,96], index: 2, kind: input, shape index: {}]   ;;  %s356_s3 = inlined_call_operand.hbm [shape: bf16[12,96], index: 3, kind: output, shape index: {}]  }
   0x1   :  { %9 = vsyncpa [#allocation7], 0 }
   0x2   :  { %10 = vsyncpa [#allocation5], 0  ;;  %s273_s12 = smov [#allocation3]   ;;  %s201_s16 = scalar_lea.hbm %s353_s0, 128 }
   0x3   :  { %s16_s13 = sshll.u32 %s273_s12, 4  ;;  %p202_p0 = scmp.ne.s32.totalorder %s353_s0, %s201_s16  ;;  %s17_s13 = int_to_ptr.vmem [resolvable:$true] %s16_s13 }
   0x4   :  { %p205_p1 = scmp.lt.u32.totalorder %s201_s16, %s353_s0 }
   0x6   :  { %p207_p2 = pnand %p205_p1, %p202_p0 }
   0x8   :  { %210 = shalt.err (!%p207_p2)
}
   0x9   :  { %s211_s21 = scalar_lea.vmem %s17_s13, 128  ;;  %p216_p4 = scmp.lt.s32.totalorder %s17_s13, %s17_s13 }
   0xa   :  { %p212_p3 = scmp.ne.s32.totalorder %s17_s13, %s211_s21  ;;  %p217_p5 = scmp.lt.s32.totalorder %s211_s21, %s211_s21 }
   0xc   :  { %p218_p6 = por %p217_p5, %p216_p4 }
   0xe   :  { %p219_p7 = pnand %p218_p6, %p212_p3 }
  0x10   :  { %222 = shalt.err (!%p219_p7)
}
  0x11   :  { %s274_s22 = smov 64   ;;  %s275_s23 = smov 4  }
  0x12   :  { %22 = dma.hbm_to_vmem [thread:$0]  %s353_s0, 128, %s17_s13, [#allocation4], %s274_s22, %s274_s22, %s275_s23  }
  0x13   :  { %s276_s26 = smov [#allocation6]   ;;  %s223_s30 = scalar_lea.hbm %s354_s1, 256 }
  0x14   :  { %s28_s27 = sshll.u32 %s276_s26, 4  ;;  %p224_p8 = scmp.ne.s32.totalorder %s354_s1, %s223_s30  ;;  %s29_s27 = int_to_ptr.vmem [resolvable:$true] %s28_s27 }
  0x15   :  { %p227_p9 = scmp.lt.u32.totalorder %s223_s30, %s354_s1 }
  0x17   :  { %p229_p10 = pnand %p227_p9, %p224_p8 }
  0x19   :  { %232 = shalt.err (!%p229_p10)
}
  0x1a   :  { %s233_s8 = scalar_lea.vmem %s29_s27, 256  ;;  %p238_p12 = scmp.lt.s32.totalorder %s29_s27, %s29_s27 }
  0x1b   :  { %p234_p11 = scmp.ne.s32.totalorder %s29_s27, %s233_s8  ;;  %p239_p13 = scmp.lt.s32.totalorder %s233_s8, %s233_s8 }
  0x1d   :  { %p240_p0 = por %p239_p13, %p238_p12 }
  0x1f   :  { %p241_p1 = pnand %p240_p0, %p234_p11 }
  0x21   :  { %244 = shalt.err (!%p241_p1)
}
  0x22   :  { %34 = dma.hbm_to_vmem [thread:$0]  %s354_s1, 256, %s29_s27, [#allocation7], %s274_s22, %s274_s22, %s275_s23  }
  0x23   :  { %267 = dma.done.wait [#allocation4], 128  }
  0x24   :  { %268 = vsyncadd [#allocation4], 4294967168 }
  0x25   :  { %269 = dma.done.wait [#allocation7], 256  }
  0x26   :  { %270 = vsyncadd [#allocation7], 4294967040  ;;  %vm48_vm0 = vcmask 785408   ;;  %v277_v0 = vmov 0.0   ;;  %vm278_vm1 = vmmov 0   ;;  %v198_v1 = vld [vmem:[#allocation6] sm:$0xff]  }
  0x27   :  { %49 = vst.msk [vmem:[#allocation2] sm:$0xff] %vm48_vm0, %v277_v0  ;;  %183 = vmatprep.subr.bf16.mxu0 %v277_v0  ;;  %187 = vmatprep.mubr.msk.bf16.mxu0 %vm278_vm1, %v277_v0  ;;  %v199_v2 = vld [vmem:[#allocation6 + $0x8] sm:$0xff]   ;;  %v200_v3 = vld [vmem:[#allocation3] sm:$0x3f]   ;;  %vm77_vm2 = vcmask 261120   ;;  %vm50_vm3 = vcmask 781312  }
  0x28   :  { %184 = vmatpush3.bf16.msra.mxu0 %v198_v1  ;;  %51 = vst.msk [vmem:[#allocation2 + $0x8] sm:$0xf] %vm50_vm3, %v277_v0  ;;  %v175_v12 = vld [vmem:[%s355_s2] ss:$0 sm:$0xff]  ;;  %s279_s11 = smov [#allocation8]   ;;  %vm151_vm4 = vcmask 779264  }
  0x29   :  { %185 = vmatprep.subr.bf16.mxu0 %v277_v0  ;;  %s158_s12 = sshll.u32 %s279_s11, 4  ;;  %s159_s12 = int_to_ptr.vmem [resolvable:$true] %s158_s12 }
  0x2a   :  { %s245_s13 = scalar_lea.vmem %s159_s12, 128  ;;  %p250_p3 = scmp.lt.s32.totalorder %s159_s12, %s159_s12 }
  0x2b   :  { %p246_p2 = scmp.ne.s32.totalorder %s159_s12, %s245_s13  ;;  %p251_p4 = scmp.lt.s32.totalorder %s245_s13, %s245_s13 }
  0x2c   :  { %186 = vmatpush3.bf16.msra.mxu0 %v199_v2 }
  0x2d   :  { %p252_p5 = por %p251_p4, %p250_p3 }
  0x2e   :  { %v52_v4 = vld [vmem:[#allocation2] sm:$0xff] }
  0x2f   :  { %188 = vmatmul.mubr.msk.bf16.vlgmr.msra.gmra.mrb[0].mxu0 %vm77_vm2, %v200_v3  ;;  %v53_v6 = vld [vmem:[#allocation2 + $0x8] sm:$0xf]  ;;  %p253_p6 = pnand %p252_p5, %p246_p2 }
 0x102   :  { %v115_v5 = vpop.f32.mrb[0].mxu0 }
 0x103   :  { %v122_v7 = vadd.f32 %v115_v5, %v52_v4  ;;  %v189_v8 = vpop.f32.mrb[1].mxu0 }
 0x104   :  { %v118_v9 = vpop.f32.mrb[2].mxu0 }
 0x105   :  { %125 = vst.msk [vmem:[#allocation2] sm:$0xff] %vm48_vm0, %v122_v7  ;;  %v123_v10 = vadd.f32 %v118_v9, %v53_v6  ;;  %v190_v11 = vpop.f32.mrb[3].mxu0 }
 0x107   :  { %127 = vst.msk [vmem:[#allocation2 + $0x8] sm:$0xf] %vm50_vm3, %v123_v10 }
 0x10c   :  { %v131_v13 = vld [vmem:[#allocation2] sm:$0xff] }
 0x10d   :  { %v140_v14 = vadd.f32 %v175_v12, %v131_v13 }
 0x10e   :  { %v132_v15 = vld [vmem:[#allocation2 + $0x8] sm:$0xf] }
 0x10f   :  { %v141_v16 = vadd.f32 %v175_v12, %v132_v15  ;;  %v178_v17 = vpack.c.bf16 %v140_v14, %v140_v14 }
 0x111   :  { %v179_v18 = vpack.c.bf16 %v141_v16, %v141_v16  ;;  %150 = vst.msk [vmem:[#allocation8] sm:$0xf] %vm50_vm3, %v178_v17 }
 0x113   :  { %152 = vst.msk [vmem:[#allocation8 + $0x4] sm:$0x3] %vm151_vm4, %v179_v18 }
 0x114   :  { %256 = shalt.err (!%p253_p6)
}
 0x115   :  { %s257_s15 = scalar_lea.hbm %s356_s3, 128 }
 0x116   :  { %p258_p7 = scmp.ne.s32.totalorder %s356_s3, %s257_s15  ;;  %p261_p8 = scmp.lt.u32.totalorder %s257_s15, %s356_s3 }
 0x118   :  { %p263_p9 = pnand %p261_p8, %p258_p7 }
 0x11a   :  { %266 = shalt.err (!%p263_p9)
}
 0x11b   :  { %164 = dma.vmem_to_hbm [thread:$0]  %s159_s12, 128, %s356_s3, [#allocation5], %s274_s22, %s274_s22, %s275_s23  }
 0x11c   :  { %271 = dma.done.wait [#allocation5], 128  }
 0x11d   :  { %272 = vsyncadd [#allocation5], 4294967168 }
 0x11e   :  { %168 = vsyncpa [#allocation4], 1 }
 0x11f   :  { %169 = vsyncpa [#allocation7], 1 }
 0x120   :  { %170 = vsyncpa [#allocation5], 1 }

</bundles_post_ra>
